<compile_context>
chip_gen: v5e
topology: v5e:2x2
jax: 0.10.0
libtpu: 0.0.40
codegen_flags: <defaults>
</compile_context>

<pallas_src>
import functools
import math

import jax
import jax.numpy as jnp
from jax.experimental import pallas as pl
from jax.experimental.pallas import tpu as pltpu


# ------------------------ Per-(batch, head) fused kernel --------------------
def _mha_per_head_kernel(xq_ref, xk_ref, xv_ref, bias_ref,
                         wq_ref, bq_ref, wk_ref, bk_ref,
                         wv_ref, bv_ref, wo_ref, bo_ref,
                         out_ref, scores_ref,
                         *, d_k, approx_recip):
    f32 = jnp.float32
    inv_sqrt_dk = 1.0 / math.sqrt(d_k)
    h = pl.program_id(1)

    x_q = xq_ref[0]                       # (n_q, d_model)  compute dtype
    x_k = xk_ref[0]                       # (n_k, d_model)
    x_v = xv_ref[0]                       # (n_k, d_model)
    cd = x_q.dtype                        # compute dtype (host pre-cast)

    # Per-head projections: only this head's d_k weight columns are in VMEM.
    # MXU matmuls with f32 accumulation; bias add in f32.
    # 1/sqrt(d_k) folded into q (n_q*d_k multiplies instead of n_q*n_k).
    q_h = (jnp.dot(x_q, wq_ref[0], preferred_element_type=f32)
           + bq_ref[0]) * inv_sqrt_dk                              # (n_q, d_k)
    k_h = jnp.dot(x_k, wk_ref[0], preferred_element_type=f32) + bk_ref[0]
    v_h = jnp.dot(x_v, wv_ref[0], preferred_element_type=f32) + bv_ref[0]

    # QK^T: contract last axes directly -- no explicit transpose of K.
    s = jax.lax.dot_general(
        q_h.astype(cd), k_h.astype(cd),
        dimension_numbers=(((1,), (1,)), ((), ())),
        preferred_element_type=f32)                                # (n_q, n_k)

    # un-masked (but already /sqrt(d_k)-scaled) scores are a module output
    scores_ref[0, 0] = s.astype(scores_ref.dtype)

    # Masked softmax entirely in f32 (v5e VPU/EUP has no bf16).
    # Additive bias (0 / -inf) reproduces torch masked_fill(-inf) + softmax,
    # including NaN rows for fully-masked queries.
    masked = s + bias_ref[0].astype(f32)
    mx = jnp.max(masked, axis=-1, keepdims=True)
    e = jnp.exp(masked - mx)
    denom = jnp.sum(e, axis=-1, keepdims=True)
    w = e * pl.reciprocal(denom, approx=approx_recip)

    attn_h = jnp.dot(w.astype(cd), v_h.astype(cd),
                     preferred_element_type=f32)                   # (n_q, d_k)

    # This head's slice of the output projection, accumulated into the
    # resident output block (head axis is the reduction / "arbitrary" axis).
    contrib = jnp.dot(attn_h.astype(cd), wo_ref[0],
                      preferred_element_type=f32)                  # (n_q, d_model)

    @pl.when(h == 0)
    def _():
        out_ref[0] = jnp.broadcast_to(bo_ref[...], out_ref.shape[1:])

    out_ref[0] += contrib


# ------------------------------ Module glue ---------------------------------
def init_params(key, d_model):
    """Deterministic nn.Linear-style init (uniform +/- 1/sqrt(fan_in)).
    Weights are stored already transposed: (d_in, d_out)."""
    bound = 1.0 / math.sqrt(d_model)
    keys = jax.random.split(key, 8)
    params = []
    for i in range(4):
        w = jax.random.uniform(keys[2 * i], (d_model, d_model),
                               minval=-bound, maxval=bound, dtype=jnp.float32)
        b = jax.random.uniform(keys[2 * i + 1], (d_model,),
                               minval=-bound, maxval=bound, dtype=jnp.float32)
        params.append((w, b))
    return params  # [(W_Q,b_Q),(W_K,b_K),(W_V,b_V),(W_O,b_O)]


def multi_head_attention(Q, K, V, mask, params, n_heads,
                         compute_dtype=jnp.bfloat16, approx_recip=True,
                         scores_dtype=jnp.float32):
    """Fused MHA forward (single pallas_call, grid over (batch, head)).

    Returns (output (B, n_q, d_model) f32, scores (B, n_heads, n_q, n_k)).
    compute_dtype=jnp.bfloat16 + approx_recip=True is the fast path for
    v5e/v6e/v7x MXUs; compute_dtype=jnp.float32 + approx_recip=False
    reproduces the f32 reference to ~1e-5.
    """
    B, n_q, d_model = Q.shape
    n_k = K.shape[1]
    d_k = d_model // n_heads
    (wq, bq), (wk, bk), (wv, bv), (wo, bo) = params

    # ---- host-side layout plumbing (would be hoisted/jitted in real use) ----
    # Per-head weight slabs so every BlockSpec's last two dims are full extents.
    def cols_per_head(w):   # (d_model, d_model) -> (H, d_model, d_k)
        return (w.reshape(d_model, n_heads, d_k)
                 .transpose(1, 0, 2).astype(compute_dtype))

    def bias_per_head(b):   # (d_model,) -> (H, 1, d_k), kept f32
        return b.reshape(n_heads, 1, d_k).astype(jnp.float32)

    wq_h, wk_h, wv_h = cols_per_head(wq), cols_per_head(wk), cols_per_head(wv)
    bq_h, bk_h, bv_h = bias_per_head(bq), bias_per_head(bk), bias_per_head(bv)
    wo_h = wo.reshape(n_heads, d_k, d_model).astype(compute_dtype)
    bo_r = bo.reshape(1, d_model).astype(jnp.float32)

    # Pre-cast activations to the compute dtype (no-op on the f32 path).
    Qc = Q.astype(compute_dtype)
    Kc = K.astype(compute_dtype)
    Vc = V.astype(compute_dtype)

    # Additive mask bias: 0 where visible, -inf where masked (bf16 is exact
    # for both values) -- one add per element instead of compare+select.
    mask_bias = jnp.where(mask == 0, -jnp.inf, 0.0).astype(jnp.bfloat16)

    kernel = functools.partial(_mha_per_head_kernel, d_k=d_k,
                               approx_recip=approx_recip)

    # ---- VMEM budget (double-buffered blocks), capped for v7x's 64 MiB ----
    cd_b = jnp.dtype(compute_dtype).itemsize
    est = (2 * (n_q + 2 * n_k) * d_model * cd_b          # Q, K, V blocks
           + 2 * n_q * n_k * 2                           # mask bias (bf16)
           + 2 * 3 * (d_model * d_k + d_k) * 4           # per-head W/b (upper bd)
           + 2 * d_k * d_model * cd_b + d_model * 4      # W_O slab + b_O
           + 2 * n_q * d_model * 4                       # out block (f32)
           + 2 * n_q * n_k * jnp.dtype(scores_dtype).itemsize)  # scores block
    vmem_limit = int(min(64 * 2**20, max(3 * est, 16 * 2**20)))

    out, scores = pl.pallas_call(
        kernel,
        out_shape=(
            jax.ShapeDtypeStruct((B, n_q, d_model), jnp.float32),
            jax.ShapeDtypeStruct((B, n_heads, n_q, n_k), scores_dtype),
        ),
        grid=(B, n_heads),
        in_specs=[
            pl.BlockSpec((1, n_q, d_model), lambda b, h: (b, 0, 0)),     # Q
            pl.BlockSpec((1, n_k, d_model), lambda b, h: (b, 0, 0)),     # K
            pl.BlockSpec((1, n_k, d_model), lambda b, h: (b, 0, 0)),     # V
            pl.BlockSpec((1, n_q, n_k),     lambda b, h: (b, 0, 0)),     # mask bias
            pl.BlockSpec((1, d_model, d_k), lambda b, h: (h, 0, 0)),     # W_Q[:,h]
            pl.BlockSpec((1, 1, d_k),       lambda b, h: (h, 0, 0)),     # b_Q[h]
            pl.BlockSpec((1, d_model, d_k), lambda b, h: (h, 0, 0)),     # W_K[:,h]
            pl.BlockSpec((1, 1, d_k),       lambda b, h: (h, 0, 0)),     # b_K[h]
            pl.BlockSpec((1, d_model, d_k), lambda b, h: (h, 0, 0)),     # W_V[:,h]
            pl.BlockSpec((1, 1, d_k),       lambda b, h: (h, 0, 0)),     # b_V[h]
            pl.BlockSpec((1, d_k, d_model), lambda b, h: (h, 0, 0)),     # W_O[h,:]
            pl.BlockSpec((1, d_model),      lambda b, h: (0, 0)),        # b_O
        ],
        out_specs=(
            # constant over the head axis -> resident accumulator (P3)
            pl.BlockSpec((1, n_q, d_model), lambda b, h: (b, 0, 0)),
            # one head's scores per step -> small, lane-dense writeback
            pl.BlockSpec((1, 1, n_q, n_k), lambda b, h: (b, h, 0, 0)),
        ),
        compiler_params=pltpu.CompilerParams(
            dimension_semantics=("parallel", "arbitrary"),
            vmem_limit_bytes=vmem_limit),
    )(Qc, Kc, Vc, mask_bias,
      wq_h, bq_h, wk_h, bk_h, wv_h, bv_h, wo_h, bo_r)
    return out, scores


# ------------------------------ Reference -----------------------------------
def _reference(Q, K, V, mask, params, n_heads):
    B, n_q, d_model = Q.shape
    n_k = K.shape[1]
    d_k = d_model // n_heads
    (wq, bq), (wk, bk), (wv, bv), (wo, bo) = params
    q = (Q @ wq + bq).reshape(B, n_q, n_heads, d_k).transpose(0, 2, 1, 3)
    k = (K @ wk + bk).reshape(B, n_k, n_heads, d_k).transpose(0, 2, 1, 3)
    v = (V @ wv + bv).reshape(B, n_k, n_heads, d_k).transpose(0, 2, 1, 3)
    scores = jnp.einsum("bhqd,bhkd->bhqk", q, k) / math.sqrt(d_k)
    masked = jnp.where(mask[:, None] == 0, -jnp.inf, scores)
    w = jax.nn.softmax(masked, axis=-1)
    attn = jnp.einsum("bhqk,bhkd->bhqd", w, v)
    attn = attn.transpose(0, 2, 1, 3).reshape(B, n_q, d_model)
    return attn @ wo + bo, scores


# -------------------------------- Main ---------------------------------------
if __name__ == "__main__":
    # NOTE: toy shapes for the correctness demo only; for performance
    # measurements use d_model / n_k that are multiples of 128 (256 on
    # v6e/v7x) so loads/stores and MXU tiles are lane-dense.
    B, n_q, n_k = 2, 8, 8
    d_model, n_heads = 32, 4

    key = jax.random.PRNGKey(0)
    k_q, k_k, k_v, k_p = jax.random.split(key, 4)
    Q = jax.random.normal(k_q, (B, n_q, d_model), dtype=jnp.float32)
    K = jax.random.normal(k_k, (B, n_k, d_model), dtype=jnp.float32)
    V = jax.random.normal(k_v, (B, n_k, d_model), dtype=jnp.float32)
    # causal-style mask (0 == masked), shape (B, n_q, n_k)
    mask = jnp.broadcast_to(
        jnp.tril(jnp.ones((n_q, n_k), dtype=jnp.float32)), (B, n_q, n_k)
    )

    params = init_params(k_p, d_model)
    ref_out, ref_scores = _reference(Q, K, V, mask, params, n_heads)

    # 1) precise path: f32 MXU operands + exact reciprocal — must match the
    #    f32 reference tightly.
    out, scores = multi_head_attention(
        Q, K, V, mask, params, n_heads,
        compute_dtype=jnp.float32, approx_recip=False)
    jax.block_until_ready(out)
    jax.block_until_ready(scores)
    assert out.shape == (B, n_q, d_model)
    assert scores.shape == (B, n_heads, n_q, n_k)
    assert jnp.allclose(out, ref_out, atol=1e-4, rtol=1e-4)
    assert jnp.allclose(scores, ref_scores, atol=1e-4, rtol=1e-4)

    # 2) fast path: bf16 MXU operands (f32 accumulation, f32 softmax) +
    #    EUP approximate reciprocal.
    out_fast, scores_fast = multi_head_attention(
        Q, K, V, mask, params, n_heads,
        compute_dtype=jnp.bfloat16, approx_recip=True)
    jax.block_until_ready(out_fast)
    jax.block_until_ready(scores_fast)
    assert jnp.allclose(out_fast, ref_out, atol=5e-2, rtol=5e-2)
    assert jnp.allclose(scores_fast, ref_scores, atol=5e-2, rtol=5e-2)

    print("KERNEL_OK")
</pallas_src>

<mosaic_0001>
module attributes {stable_mosaic.version = 11 : i64} {
  func.func @_mha_per_head_kernel(%arg0: i32, %arg1: i32, %arg2: memref<1x8x32xf32, #tpu.memory_space<vmem>>, %arg3: memref<1x8x32xf32, #tpu.memory_space<vmem>>, %arg4: memref<1x8x32xf32, #tpu.memory_space<vmem>>, %arg5: memref<1x8x8xbf16, #tpu.memory_space<vmem>>, %arg6: memref<1x32x8xf32, #tpu.memory_space<vmem>>, %arg7: memref<1x1x8xf32, #tpu.memory_space<vmem>>, %arg8: memref<1x32x8xf32, #tpu.memory_space<vmem>>, %arg9: memref<1x1x8xf32, #tpu.memory_space<vmem>>, %arg10: memref<1x32x8xf32, #tpu.memory_space<vmem>>, %arg11: memref<1x1x8xf32, #tpu.memory_space<vmem>>, %arg12: memref<1x8x32xf32, #tpu.memory_space<vmem>>, %arg13: memref<1x32xf32, #tpu.memory_space<vmem>>, %arg14: memref<1x8x32xf32, #tpu.memory_space<vmem>>, %arg15: memref<1x1x8x8xf32, #tpu.memory_space<vmem>>) attributes {dimension_semantics = [#tpu.dimension_semantics<parallel>, #tpu.dimension_semantics<arbitrary>], iteration_bounds = array<i64: 2, 4>, scalar_prefetch = 0 : i64, scratch_operands = 0 : i64, tpu.core_type = #tpu.core_type<tc>, window_params = [{transform_indices = @transform_0, window_bounds = array<i64: 1, 8, 32>}, {transform_indices = @transform_1, window_bounds = array<i64: 1, 8, 32>}, {transform_indices = @transform_2, window_bounds = array<i64: 1, 8, 32>}, {transform_indices = @transform_3, window_bounds = array<i64: 1, 8, 8>}, {transform_indices = @transform_4, window_bounds = array<i64: 1, 32, 8>}, {transform_indices = @transform_5, window_bounds = array<i64: 1, 1, 8>}, {transform_indices = @transform_6, window_bounds = array<i64: 1, 32, 8>}, {transform_indices = @transform_7, window_bounds = array<i64: 1, 1, 8>}, {transform_indices = @transform_8, window_bounds = array<i64: 1, 32, 8>}, {transform_indices = @transform_9, window_bounds = array<i64: 1, 1, 8>}, {transform_indices = @transform_10, window_bounds = array<i64: 1, 8, 32>}, {pipeline_mode = #tpu.pipeline_mode<synchronous>, transform_indices = @transform_11, window_bounds = array<i64: 1, 32>}, {transform_indices = @transform_12, window_bounds = array<i64: 1, 8, 32>}, {transform_indices = @transform_13, window_bounds = array<i64: 1, 1, 8, 8>}]} {
    %c0 = arith.constant 0 : index
    %c0_0 = arith.constant 0 : index
    %c0_1 = arith.constant 0 : index
    %0 = vector.load %arg2[%c0, %c0_0, %c0_1] : memref<1x8x32xf32, #tpu.memory_space<vmem>>, vector<1x8x32xf32>
    %1 = vector.shape_cast %0 : vector<1x8x32xf32> to vector<8x32xf32>
    %c0_2 = arith.constant 0 : index
    %c0_3 = arith.constant 0 : index
    %c0_4 = arith.constant 0 : index
    %2 = vector.load %arg3[%c0_2, %c0_3, %c0_4] : memref<1x8x32xf32, #tpu.memory_space<vmem>>, vector<1x8x32xf32>
    %3 = vector.shape_cast %2 : vector<1x8x32xf32> to vector<8x32xf32>
    %c0_5 = arith.constant 0 : index
    %c0_6 = arith.constant 0 : index
    %c0_7 = arith.constant 0 : index
    %4 = vector.load %arg4[%c0_5, %c0_6, %c0_7] : memref<1x8x32xf32, #tpu.memory_space<vmem>>, vector<1x8x32xf32>
    %5 = vector.shape_cast %4 : vector<1x8x32xf32> to vector<8x32xf32>
    %c0_8 = arith.constant 0 : index
    %c0_9 = arith.constant 0 : index
    %c0_10 = arith.constant 0 : index
    %6 = vector.load %arg6[%c0_8, %c0_9, %c0_10] : memref<1x32x8xf32, #tpu.memory_space<vmem>>, vector<1x32x8xf32>
    %7 = vector.shape_cast %6 : vector<1x32x8xf32> to vector<32x8xf32>
    %cst = arith.constant dense<0.000000e+00> : vector<8x8xf32>
    %8 = tpu.matmul %1, %7, %cst {dimension_numbers = #tpu.dot_dimension_numbers<[1], [0], [0], [1], [0, 0, 1, 1], [], []>} : vector<8x32xf32>, vector<32x8xf32>, vector<8x8xf32> -> vector<8x8xf32>
    %c0_11 = arith.constant 0 : index
    %c0_12 = arith.constant 0 : index
    %c0_13 = arith.constant 0 : index
    %9 = vector.load %arg7[%c0_11, %c0_12, %c0_13] : memref<1x1x8xf32, #tpu.memory_space<vmem>>, vector<1x1x8xf32>
    %10 = vector.shape_cast %9 : vector<1x1x8xf32> to vector<1x8xf32>
    %11 = vector.broadcast %10 : vector<1x8xf32> to vector<8x8xf32>
    %12 = arith.addf %8, %11 : vector<8x8xf32>
    %cst_14 = arith.constant 0.353553385 : f32
    %13 = vector.broadcast %cst_14 : f32 to vector<8x8xf32>
    %14 = arith.mulf %12, %13 : vector<8x8xf32>
    %c0_15 = arith.constant 0 : index
    %c0_16 = arith.constant 0 : index
    %c0_17 = arith.constant 0 : index
    %15 = vector.load %arg8[%c0_15, %c0_16, %c0_17] : memref<1x32x8xf32, #tpu.memory_space<vmem>>, vector<1x32x8xf32>
    %16 = vector.shape_cast %15 : vector<1x32x8xf32> to vector<32x8xf32>
    %cst_18 = arith.constant dense<0.000000e+00> : vector<8x8xf32>
    %17 = tpu.matmul %3, %16, %cst_18 {dimension_numbers = #tpu.dot_dimension_numbers<[1], [0], [0], [1], [0, 0, 1, 1], [], []>} : vector<8x32xf32>, vector<32x8xf32>, vector<8x8xf32> -> vector<8x8xf32>
    %c0_19 = arith.constant 0 : index
    %c0_20 = arith.constant 0 : index
    %c0_21 = arith.constant 0 : index
    %18 = vector.load %arg9[%c0_19, %c0_20, %c0_21] : memref<1x1x8xf32, #tpu.memory_space<vmem>>, vector<1x1x8xf32>
    %19 = vector.shape_cast %18 : vector<1x1x8xf32> to vector<1x8xf32>
    %20 = vector.broadcast %19 : vector<1x8xf32> to vector<8x8xf32>
    %21 = arith.addf %17, %20 : vector<8x8xf32>
    %c0_22 = arith.constant 0 : index
    %c0_23 = arith.constant 0 : index
    %c0_24 = arith.constant 0 : index
    %22 = vector.load %arg10[%c0_22, %c0_23, %c0_24] : memref<1x32x8xf32, #tpu.memory_space<vmem>>, vector<1x32x8xf32>
    %23 = vector.shape_cast %22 : vector<1x32x8xf32> to vector<32x8xf32>
    %cst_25 = arith.constant dense<0.000000e+00> : vector<8x8xf32>
    %24 = tpu.matmul %5, %23, %cst_25 {dimension_numbers = #tpu.dot_dimension_numbers<[1], [0], [0], [1], [0, 0, 1, 1], [], []>} : vector<8x32xf32>, vector<32x8xf32>, vector<8x8xf32> -> vector<8x8xf32>
    %c0_26 = arith.constant 0 : index
    %c0_27 = arith.constant 0 : index
    %c0_28 = arith.constant 0 : index
    %25 = vector.load %arg11[%c0_26, %c0_27, %c0_28] : memref<1x1x8xf32, #tpu.memory_space<vmem>>, vector<1x1x8xf32>
    %26 = vector.shape_cast %25 : vector<1x1x8xf32> to vector<1x8xf32>
    %27 = vector.broadcast %26 : vector<1x8xf32> to vector<8x8xf32>
    %28 = arith.addf %24, %27 : vector<8x8xf32>
    %cst_29 = arith.constant dense<0.000000e+00> : vector<8x8xf32>
    %29 = tpu.matmul %14, %21, %cst_29 {dimension_numbers = #tpu.dot_dimension_numbers<[1], [1], [0], [0], [0, 0, 1, 0], [], []>} : vector<8x8xf32>, vector<8x8xf32>, vector<8x8xf32> -> vector<8x8xf32>
    %c0_30 = arith.constant 0 : index
    %c0_31 = arith.constant 0 : index
    %c0_32 = arith.constant 0 : index
    %c0_33 = arith.constant 0 : index
    %30 = vector.load %arg15[%c0_30, %c0_31, %c0_32, %c0_33] : memref<1x1x8x8xf32, #tpu.memory_space<vmem>>, vector<1x1x8x8xf32>
    %31 = vector.shape_cast %30 : vector<1x1x8x8xf32> to vector<8x8xf32>
    %32 = vector.shape_cast %29 : vector<8x8xf32> to vector<1x1x8x8xf32>
    tpu.vector_store %arg15[%c0_30, %c0_31, %c0_32, %c0_33], %32 {strides = array<i32>} : memref<1x1x8x8xf32, #tpu.memory_space<vmem>>, vector<1x1x8x8xf32>,
    %c0_34 = arith.constant 0 : index
    %c0_35 = arith.constant 0 : index
    %c0_36 = arith.constant 0 : index
    %33 = vector.load %arg5[%c0_34, %c0_35, %c0_36] : memref<1x8x8xbf16, #tpu.memory_space<vmem>>, vector<1x8x8xbf16>
    %34 = vector.shape_cast %33 : vector<1x8x8xbf16> to vector<8x8xbf16>
    %35 = arith.extf %34 : vector<8x8xbf16> to vector<8x8xf32>
    %36 = arith.addf %29, %35 : vector<8x8xf32>
    %cst_37 = arith.constant dense<0xFF800000> : vector<8xf32>
    %37 = vector.multi_reduction <maximumf>, %36, %cst_37 [1] : vector<8x8xf32> to vector<8xf32>
    %38 = vector.shape_cast %37 : vector<8xf32> to vector<8x1xf32>
    %39 = vector.broadcast %38 : vector<8x1xf32> to vector<8x8xf32>
    %40 = arith.subf %36, %39 : vector<8x8xf32>
    %41 = math.exp %40 : vector<8x8xf32>
    %cst_38 = arith.constant dense<0.000000e+00> : vector<8xf32>
    %42 = vector.multi_reduction <add>, %41, %cst_38 [1] : vector<8x8xf32> to vector<8xf32>
    %43 = vector.shape_cast %42 : vector<8xf32> to vector<8x1xf32>
    %44 = tpu.reciprocal %43 : vector<8x1xf32> -> vector<8x1xf32>
    %45 = vector.broadcast %44 : vector<8x1xf32> to vector<8x8xf32>
    %46 = arith.mulf %41, %45 : vector<8x8xf32>
    %cst_39 = arith.constant dense<0.000000e+00> : vector<8x8xf32>
    %47 = tpu.matmul %46, %28, %cst_39 {dimension_numbers = #tpu.dot_dimension_numbers<[1], [0], [0], [1], [0, 0, 1, 1], [], []>} : vector<8x8xf32>, vector<8x8xf32>, vector<8x8xf32> -> vector<8x8xf32>
    %c0_40 = arith.constant 0 : index
    %c0_41 = arith.constant 0 : index
    %c0_42 = arith.constant 0 : index
    %48 = vector.load %arg12[%c0_40, %c0_41, %c0_42] : memref<1x8x32xf32, #tpu.memory_space<vmem>>, vector<1x8x32xf32>
    %49 = vector.shape_cast %48 : vector<1x8x32xf32> to vector<8x32xf32>
    %cst_43 = arith.constant dense<0.000000e+00> : vector<8x32xf32>
    %50 = tpu.matmul %47, %49, %cst_43 {dimension_numbers = #tpu.dot_dimension_numbers<[1], [0], [0], [1], [0, 0, 1, 1], [], []>} : vector<8x8xf32>, vector<8x32xf32>, vector<8x32xf32> -> vector<8x32xf32>
    %c0_i32 = arith.constant 0 : i32
    %51 = arith.cmpi eq, %arg1, %c0_i32 : i32
    %52 = arith.extui %51 : i1 to i32
    %c0_i32_44 = arith.constant 0 : i32
    %53 = arith.cmpi ne, %52, %c0_i32_44 : i32
    scf.if %53 {
      %c0_51 = arith.constant 0 : index
      %c0_52 = arith.constant 0 : index
      %60 = vector.load %arg13[%c0_51, %c0_52] : memref<1x32xf32, #tpu.memory_space<vmem>>, vector<1x32xf32>
      %61 = vector.shape_cast %60 : vector<1x32xf32> to vector<1x32xf32>
      %62 = vector.broadcast %61 : vector<1x32xf32> to vector<8x32xf32>
      %c0_53 = arith.constant 0 : index
      %c0_54 = arith.constant 0 : index
      %c0_55 = arith.constant 0 : index
      %63 = vector.load %arg14[%c0_53, %c0_54, %c0_55] : memref<1x8x32xf32, #tpu.memory_space<vmem>>, vector<1x8x32xf32>
      %64 = vector.shape_cast %63 : vector<1x8x32xf32> to vector<8x32xf32>
      %65 = vector.shape_cast %62 : vector<8x32xf32> to vector<1x8x32xf32>
      tpu.vector_store %arg14[%c0_53, %c0_54, %c0_55], %65 {strides = array<i32>} : memref<1x8x32xf32, #tpu.memory_space<vmem>>, vector<1x8x32xf32>,
    } else {
    }
    %c0_45 = arith.constant 0 : index
    %c0_46 = arith.constant 0 : index
    %c0_47 = arith.constant 0 : index
    %54 = vector.load %arg14[%c0_45, %c0_46, %c0_47] : memref<1x8x32xf32, #tpu.memory_space<vmem>>, vector<1x8x32xf32>
    %55 = vector.shape_cast %54 : vector<1x8x32xf32> to vector<8x32xf32>
    %56 = arith.addf %55, %50 : vector<8x32xf32>
    %c0_48 = arith.constant 0 : index
    %c0_49 = arith.constant 0 : index
    %c0_50 = arith.constant 0 : index
    %57 = vector.load %arg14[%c0_48, %c0_49, %c0_50] : memref<1x8x32xf32, #tpu.memory_space<vmem>>, vector<1x8x32xf32>
    %58 = vector.shape_cast %57 : vector<1x8x32xf32> to vector<8x32xf32>
    %59 = vector.shape_cast %56 : vector<8x32xf32> to vector<1x8x32xf32>
    tpu.vector_store %arg14[%c0_48, %c0_49, %c0_50], %59 {strides = array<i32>} : memref<1x8x32xf32, #tpu.memory_space<vmem>>, vector<1x8x32xf32>,
    return
  }
  func.func @transform_0(%arg0: i32, %arg1: i32) -> (i32, i32, i32) {
    %c0_i32 = arith.constant 0 : i32
    %c0_i32_0 = arith.constant 0 : i32
    %c0_i32_1 = arith.constant 0 : i32
    return %arg0, %c0_i32, %c0_i32_0 : i32, i32, i32
  }
  func.func @transform_1(%arg0: i32, %arg1: i32) -> (i32, i32, i32) {
    %c0_i32 = arith.constant 0 : i32
    %c0_i32_0 = arith.constant 0 : i32
    %c0_i32_1 = arith.constant 0 : i32
    return %arg0, %c0_i32, %c0_i32_0 : i32, i32, i32
  }
  func.func @transform_2(%arg0: i32, %arg1: i32) -> (i32, i32, i32) {
    %c0_i32 = arith.constant 0 : i32
    %c0_i32_0 = arith.constant 0 : i32
    %c0_i32_1 = arith.constant 0 : i32
    return %arg0, %c0_i32, %c0_i32_0 : i32, i32, i32
  }
  func.func @transform_3(%arg0: i32, %arg1: i32) -> (i32, i32, i32) {
    %c0_i32 = arith.constant 0 : i32
    %c0_i32_0 = arith.constant 0 : i32
    %c0_i32_1 = arith.constant 0 : i32
    return %arg0, %c0_i32, %c0_i32_0 : i32, i32, i32
  }
  func.func @transform_4(%arg0: i32, %arg1: i32) -> (i32, i32, i32) {
    %c0_i32 = arith.constant 0 : i32
    %c0_i32_0 = arith.constant 0 : i32
    %c0_i32_1 = arith.constant 0 : i32
    return %arg1, %c0_i32, %c0_i32_0 : i32, i32, i32
  }
  func.func @transform_5(%arg0: i32, %arg1: i32) -> (i32, i32, i32) {
    %c0_i32 = arith.constant 0 : i32
    %c0_i32_0 = arith.constant 0 : i32
    %c0_i32_1 = arith.constant 0 : i32
    return %arg1, %c0_i32, %c0_i32_0 : i32, i32, i32
  }
  func.func @transform_6(%arg0: i32, %arg1: i32) -> (i32, i32, i32) {
    %c0_i32 = arith.constant 0 : i32
    %c0_i32_0 = arith.constant 0 : i32
    %c0_i32_1 = arith.constant 0 : i32
    return %arg1, %c0_i32, %c0_i32_0 : i32, i32, i32
  }
  func.func @transform_7(%arg0: i32, %arg1: i32) -> (i32, i32, i32) {
    %c0_i32 = arith.constant 0 : i32
    %c0_i32_0 = arith.constant 0 : i32
    %c0_i32_1 = arith.constant 0 : i32
    return %arg1, %c0_i32, %c0_i32_0 : i32, i32, i32
  }
  func.func @transform_8(%arg0: i32, %arg1: i32) -> (i32, i32, i32) {
    %c0_i32 = arith.constant 0 : i32
    %c0_i32_0 = arith.constant 0 : i32
    %c0_i32_1 = arith.constant 0 : i32
    return %arg1, %c0_i32, %c0_i32_0 : i32, i32, i32
  }
  func.func @transform_9(%arg0: i32, %arg1: i32) -> (i32, i32, i32) {
    %c0_i32 = arith.constant 0 : i32
    %c0_i32_0 = arith.constant 0 : i32
    %c0_i32_1 = arith.constant 0 : i32
    return %arg1, %c0_i32, %c0_i32_0 : i32, i32, i32
  }
  func.func @transform_10(%arg0: i32, %arg1: i32) -> (i32, i32, i32) {
    %c0_i32 = arith.constant 0 : i32
    %c0_i32_0 = arith.constant 0 : i32
    %c0_i32_1 = arith.constant 0 : i32
    return %arg1, %c0_i32, %c0_i32_0 : i32, i32, i32
  }
  func.func @transform_11(%arg0: i32, %arg1: i32) -> (i32, i32) {
    %c0_i32 = arith.constant 0 : i32
    %c0_i32_0 = arith.constant 0 : i32
    %c0_i32_1 = arith.constant 0 : i32
    return %c0_i32, %c0_i32_0 : i32, i32
  }
  func.func @transform_12(%arg0: i32, %arg1: i32) -> (i32, i32, i32) {
    %c0_i32 = arith.constant 0 : i32
    %c0_i32_0 = arith.constant 0 : i32
    %c0_i32_1 = arith.constant 0 : i32
    return %arg0, %c0_i32, %c0_i32_0 : i32, i32, i32
  }
  func.func @transform_13(%arg0: i32, %arg1: i32) -> (i32, i32, i32, i32) {
    %c0_i32 = arith.constant 0 : i32
    %c0_i32_0 = arith.constant 0 : i32
    %c0_i32_1 = arith.constant 0 : i32
    return %arg0, %arg1, %c0_i32, %c0_i32_0 : i32, i32, i32, i32
  }
}

</mosaic_0001>

<bundles_post_ra>
// kernel: tpu_custom_call.1
= control target key start
LH: loop header
LB: loop body
LE: loop exit
PB: predicated region body
PF: predicated region fallthrough
CT: control target
= control target key end

     0   :  { %s1743_s0 = inlined_call_operand.vmem [shape: f32[2,8,32], index: 0, kind: input, shape index: {}]   ;;  %s1744_s1 = inlined_call_operand.vmem [shape: f32[2,8,32], index: 1, kind: input, shape index: {}]   ;;  %s1745_s2 = inlined_call_operand.vmem [shape: f32[2,8,32], index: 2, kind: input, shape index: {}]   ;;  %s1746_s3 = inlined_call_operand.vmem [shape: bf16[2,8,8], index: 3, kind: input, shape index: {}]   ;;  %s1747_s4 = inlined_call_operand.vmem [shape: f32[4,32,8], index: 4, kind: input, shape index: {}]   ;;  %s1748_s5 = inlined_call_operand.vmem [shape: f32[4,1,8], index: 5, kind: input, shape index: {}]   ;;  %s1749_s6 = inlined_call_operand.vmem [shape: f32[4,32,8], index: 6, kind: input, shape index: {}]   ;;  %s1750_s7 = inlined_call_operand.vmem [shape: f32[4,1,8], index: 7, kind: input, shape index: {}]   ;;  %s1751_s8 = inlined_call_operand.vmem [shape: f32[4,32,8], index: 8, kind: input, shape index: {}]   ;;  %s1752_s9 = inlined_call_operand.vmem [shape: f32[4,1,8], index: 9, kind: input, shape index: {}]   ;;  %s1753_s10 = inlined_call_operand.vmem [shape: f32[4,8,32], index: 10, kind: input, shape index: {}]   ;;  %s1754_s11 = inlined_call_operand.vmem [shape: f32[1,32], index: 11, kind: input, shape index: {}]   ;;  %s1755_s12 = inlined_call_operand.hbm [shape: f32[2,8,32], index: 12, kind: output, shape index: {0}]   ;;  %s1756_s13 = inlined_call_operand.hbm [shape: f32[2,4,8,8], index: 13, kind: output, shape index: {1}]  }
   0x1   :  { %1771 = sst [smem:[#allocation19_spill]] %s1743_s0 }
   0x2   :  { %1772 = sst [smem:[#allocation20_spill]] %s1744_s1 }
   0x3   :  { %1773 = sst [smem:[#allocation21_spill]] %s1745_s2 }
   0x4   :  { %1774 = sst [smem:[#allocation22_spill]] %s1747_s4 }
   0x5   :  { %1775 = sst [smem:[#allocation23_spill]] %s1749_s6 }
   0x6   :  { %1776 = sst [smem:[#allocation24_spill]] %s1750_s7 }
   0x7   :  { %1777 = sst [smem:[#allocation25_spill]] %s1752_s9 }
   0x8   :  { %1778 = sst [smem:[#allocation26_spill]] %s1753_s10 }
   0x9   :  { %1779 = sst [smem:[#allocation27_spill]] %s1754_s11 }
   0xa   :  { %1780 = sst [smem:[#allocation28_spill]] %s1755_s12 }
   0xb   :  { %1781 = sst [smem:[#allocation29_spill]] %s1756_s13 }
   0xc   :  { %19 = vsyncpa [#allocation3], 0 }
   0xd   :  { %21 = vsyncpa [#allocation3 + $0x1], 0 }
   0xe   :  { %22 = vsyncpa [#allocation5], 0 }
   0xf   :  { %24 = vsyncpa [#allocation5 + $0x1], 0  ;;  %s1462_s25 = smov 0   ;;  %s1464_s26 = smov 0  }
  0x10   :  { %s1466_s27 = smov 0   ;;  %s1468_s28 = smov 0  }
  0x11   :  { %s1470_s29 = smov 0   ;;  %s1472_s30 = smov 0  }
  0x12   :  { %s1474_s14 = smov 0   ;;  %s1476_s15 = smov 0  }
  0x13   :  { %s1478_s16 = smov 0   ;;  %s1480_s17 = smov 0  }
  0x14   :  { %s1482_s18 = smov 0  }
  0x15 LB: > { %1782 = sst [smem:[#allocation8_spill]] %s1358_s27  ;;  %s1096_s19 = sadd.s32 4294967295, %s1390_s18   ;;  %s1390_s18 = sphi %s1482_s18, %s30_s18   ;;  %s1386_s17 = sphi %s1480_s17, %s1823_s17   ;;  %s1382_s16 = sphi %s1478_s16, %s1822_s16   ;;  %s1378_s15 = sphi %s1476_s15, %s1821_s15   ;;  %s1374_s14 = sphi %s1474_s14, %s1820_s14   ;;  %s1370_s30 = sphi %s1472_s30, %s1828_s30   ;;  %s1366_s29 = sphi %s1470_s29, %s1827_s29   ;;  %s1362_s28 = sphi %s1468_s28, %s1826_s28   ;;  %s1358_s27 = sphi %s1466_s27, %s1817_s27   ;;  %s1354_s26 = sphi %s1464_s26, %s1825_s26   ;;  %s1350_s25 = sphi %s1462_s25, %s1824_s25  }
  0x16   : > { %1783 = sst [smem:[#allocation9_spill]] %s1362_s28  ;;  %s1097_s20 = sadd.s32 4294967294, %s1390_s18  }
  0x17   : > { %1784 = sst [smem:[#allocation10_spill]] %s1370_s30  ;;  %s39_s21 = sadd.s32 1, %s1382_s16 }
  0x18   : > { %1785 = sst [smem:[#allocation11_spill]] %s1382_s16  ;;  %s42_s22 = sadd.s32 1, %s1386_s17 }
  0x19   : > { %1786 = sst [smem:[#allocation12_spill]] %s1386_s17  ;;  %p40_p0 = scmp.ge.s32.totalorder %s39_s21, 4 }
  0x1a   : > { %s356_s23 = sadd.s32 1, %s1370_s30  ;;  %p366_p1 = scmp.ne.s32.totalorder %s1370_s30, %s1366_s29 }
  0x1b   : > { %p1524_p2 = scmp.eq.s32.totalorder %s1096_s19, 7  ;;  %s1830_s21 = smov (%p40_p0, %s39_s21), 0 }
  0x1c   : > { %1788 = sst [smem:[#allocation13_spill]] %s1830_s21  ;;  %s1832_s22 = smov (!%p40_p0, %s42_s22), %s1386_s17 }
  0x1d   : > { %p1533_p3 = por %p1524_p2, %p366_p1  ;;  %p372_p4 = scmp.ne.s32.totalorder %s1366_s29, %s1362_s28 }
  0x1e   : > { %p44_p5 = scmp.ge.s32.totalorder %s1832_s22, 2  ;;  %p1539_p6 = scmp.eq.s32.totalorder %s1097_s20, 7 }
  0x1f   : > { %s1789_s13 = scalar_select %p1533_p3, 1, 0 }
  0x20   : > { %s380_s12 = ssub.s32 %s1382_s16, %s1830_s21  ;;  %s384_s11 = sadd.s32 1, %s1358_s27 }
  0x21   : > { %1790 = sst [smem:[#allocation14_spill]] %s1789_s13  ;;  %s1834_s22 = smov (%p44_p5, %s1832_s22), 0 }
  0x22   : > { %1792 = sst [smem:[#allocation15_spill]] %s1834_s22  ;;  %p1550_p7 = por %p1539_p6, %p372_p4 }
  0x23   : > { %p394_p8 = scmp.ne.s32.totalorder %s1358_s27, %s1354_s26  ;;  %s353_s28 = ssub.s32 %s1386_s17, %s1834_s22 }
  0x24   : > { %p400_p9 = scmp.ne.s32.totalorder %s1354_s26, %s1350_s25  ;;  %p354_p10 = scmp.eq.s32.totalorder %s353_s28, 0 }
  0x25   : > { %s381_s20 = sor.u32 %s380_s12, %s353_s28  ;;  %p1562_p12 = por %p394_p8, %p1524_p2 }
  0x26   : > { %p382_p11 = scmp.eq.s32.totalorder %s381_s20, 0  ;;  %p1574_p13 = por %p400_p9, %p1539_p6 }
  0x27   : > { %s1567_s21 = scalar_select %p354_p10, %s1370_s30, %s356_s23  }
  0x28   : > { %s1570_s16 = scalar_select %p382_p11, %s1358_s27, %s384_s11  }
  0x29   : > { %1795 = sst [smem:[#allocation16_spill]] %s1567_s21  ;;  %p1100_p0 = scmp.ge.s32.totalorder %s1390_s18, 1 }
  0x2a   : > { %1796 = sst [smem:[#allocation17_spill]] %s1570_s16  ;;  %p499_p1 = scmp.lt.s32.totalorder %s1390_s18, 9 }
  0x2b   : > { %s1797_s9 = scalar_select %p1574_p13, 1, 0 }
  0x2c   : > { %p500_p4 = pnand %p1100_p0, %p499_p1 }
  0x2d   : > { %1798 = sst [smem:[#allocation18_spill]] %s1797_s9  ;;  %p603_p2 = scmp.lt.s32.totalorder (!%p500_p4), %s1374_s14, 3 }
  0x2e   : > { %503 = sbr.rel (%p500_p4) target bundleno = 894 (0x37e), region = 68  ;;  %s1767_s12 = sand.u32 (!%p500_p4), 1, %s1366_s29  }
  0x2f   : > { %s1584_s11 = sshll.u32 (!%p500_p4), %s1767_s12, 3  ;;  %p587_p5 = scmp.lt.s32.totalorder (!%p500_p4), %s1378_s15, 1 }
  0x30   : > { %s1799_s7 = sld [smem:[#allocation24_spill]] (!%p500_p4)  ;;  %s1770_s30 = sand.u32 (!%p500_p4), 1, %s1354_s26  }
  0x31   : > { %s1800_s6 = sld [smem:[#allocation23_spill]] (!%p500_p4)  ;;  %s1638_s17 = sshll.u32 (!%p500_p4), %s1770_s30, 3 }
  0x32   : > { %s1801_s4 = sld [smem:[#allocation22_spill]] (!%p500_p4)  ;;  %p1121_p6 = scmp.ne.s32.totalorder (!%p500_p4), %s1374_s14, 0 }
  0x33   : > { %s1588_s28 = scalar_select %p603_p2, %s1374_s14, 3  ;;  %vm642_vm0 = vcmask 261120   ;;  %vm729_vm1 = vcmask 64512  }
  0x34   : > { %s1606_s27 = scalar_select %p587_p5, %s1378_s15, 1 }
  0x35   : > { %s1591_s23 = sshll.u32 %s1588_s28, 5  ;;  %s1802_s1 = sld [smem:[#allocation20_spill]] }
  0x36   : > { %s618_s20 = scalar_lea.vmem %s1799_s7, %s1588_s28  ;;  %s1609_s24 = sshll.u32 %s1606_s27, 3 }
  0x37   : > { %s615_s21 = scalar_lea.vmem %s1800_s6, %s1591_s23  ;;  %s1803_s0 = sld [smem:[#allocation19_spill]]  ;;  %v1232_v10 = vld [vmem:[%s618_s20] ss:$0 sm:$0xff] }
  0x38   : > { %s607_s16 = scalar_lea.vmem %s1801_s4, %s1591_s23  ;;  %v670_v0 = vld [vmem:[%s615_s21 + $0x18] sm:$0xff]  ;;  %v669_v2 = vld [vmem:[%s615_s21 + $0x10] sm:$0xff]  ;;  %v668_v4 = vld [vmem:[%s615_s21 + $0x8] sm:$0xff]  ;;  %s610_s9 = scalar_lea.vmem %s1748_s5, %s1588_s28 }
  0x39   : > { %v637_v1 = vld [vmem:[%s607_s16 + $0x18] sm:$0xff]  ;;  %690 = vmatpush.msra.mxu1 %v670_v0  ;;  %v636_v3 = vld [vmem:[%s607_s16 + $0x10] sm:$0xff]  ;;  %v635_v5 = vld [vmem:[%s607_s16 + $0x8] sm:$0xff]  ;;  %s623_s7 = scalar_lea.vmem %s1751_s8, %s1591_s23  ;;  %s1804_s2 = sld [smem:[#allocation21_spill]] }
  0x3a   : > { %658 = vmatpush.msra.mxu0 %v637_v1  ;;  %v667_v6 = vld [vmem:[%s615_s21] sm:$0xff]  ;;  %v701_v17 = vld [vmem:[%s623_s7 + $0x18] sm:$0xff]  ;;  %v700_v23 = vld [vmem:[%s623_s7 + $0x10] sm:$0xff]  ;;  %s1805_s6 = sld [smem:[#allocation25_spill]] }
  0x3b   : > { %691 = vmatpush.msra.mxu1 %v669_v2  ;;  %s594_s22 = scalar_lea.vmem %s1802_s1, %s1609_s24  ;;  %v634_v7 = vld [vmem:[%s607_s16] sm:$0xff]  ;;  %721 = vmatpush.msra.mxu2 %v701_v17  ;;  %s1106_s16 = sshll.u32 %s1606_s27, 2  ;;  %v699_v24 = vld [vmem:[%s623_s7 + $0x8] sm:$0xff] }
  0x3c   : > { %659 = vmatpush.msra.mxu0 %v636_v3  ;;  %v632_v8 = vld [vmem:[%s594_s22] sm:$0xff]  ;;  %s602_s20 = scalar_lea.vmem %s1746_s3, %s1106_s16  ;;  %s586_s22 = scalar_lea.vmem [#allocation4], %s1638_s17 }
  0x3d   : > { %s590_s4 = scalar_lea.vmem %s1803_s0, %s1609_s24  ;;  %692 = vmatpush.msra.mxu1 %v668_v4  ;;  %v1233_v11 = vld [vmem:[%s610_s9] ss:$0 sm:$0xff]  ;;  %722 = vmatpush.msra.mxu2 %v700_v23  ;;  %s1806_s21 = sld [smem:[#allocation26_spill]] }
  0x3e   : > { %660 = vmatpush.msra.mxu0 %v635_v5  ;;  %v631_v9 = vld [vmem:[%s590_s4] sm:$0xff] }
  0x3f   : > { %693 = vmatpush.msra.mxu1 %v667_v6  ;;  %v757_v18 = vld [vmem:[%s602_s20] sm:$0xf]  ;;  %s598_s12 = scalar_lea.vmem %s1804_s2, %s1609_s24  ;;  %723 = vmatpush.msra.mxu2 %v699_v24  ;;  %s1113_s24 = sshll.u32 %s1588_s28, 3 }
  0x40   : > { %661 = vmatpush.msra.mxu0 %v634_v7  ;;  %1115 = vmatmul.msk.f32.vlgmr.msra.gmra.mxu1 %vm642_vm0, %v632_v8  ;;  %v758_v19 = vunpack.c.l.bf16 %v757_v18  ;;  %v698_v25 = vld [vmem:[%s623_s7] sm:$0xff]  ;;  %s626_s16 = scalar_lea.vmem %s1805_s6, %s1588_s28  ;;  %s579_s28 = scalar_lea.vmem [#allocation2], %s1584_s11 }
  0x41   : > { %1114 = vmatmul.msk.f32.vlgmr.msra.gmra.mxu0 %vm642_vm0, %v631_v9  ;;  %v633_v26 = vld [vmem:[%s598_s12] sm:$0xff]  ;;  %724 = vmatpush.msra.mxu2 %v698_v25  ;;  %s1807_s12 = sld [smem:[#allocation27_spill]] (!%p1121_p6) }
  0x42   : > { %1116 = vmatmul.msk.f32.vlgmr.msra.gmra.mxu2 %vm642_vm0, %v633_v26  ;;  %v1234_v32 = vld [vmem:[%s626_s16] ss:$0 sm:$0xff] }
  0x43   : > { %s630_s20 = scalar_lea.vmem %s1806_s21, %s1113_s24 }
  0x44   : > { %v807_v35 = vld [vmem:[%s630_s20] sm:$0xff] }
  0x45   : > { %826 = vmatpush.msrb.mxu0 %v807_v35 }
  0xbd   : > { %v695_v12 = vpop.f32.mrf.mxu1 }
  0xbe   : > { %v663_v13 = vpop.f32.mrf.mxu0  ;;  %v696_v14 = vadd.f32 %v1232_v10, %v695_v12 }
  0xbf   : > { %v664_v15 = vadd.f32 %v1233_v11, %v663_v13 }
  0xc0   : > { %1117 = vmatpush.xpose.msk.msra.mxu3 %vm729_vm1, %v696_v14 }
  0xc1   : > { %v666_v16 = vmul.f32 0.35355338, %v664_v15 }
  0xc3   : > { %1118 = vmatmul.msk.f32.vlgmr.msra.gmra.mxu3 %vm729_vm1, %v666_v16 }
  0xc5   : > { %v726_v33 = vpop.f32.mrf.mxu2 }
  0xc6   : > { %v727_v34 = vadd.f32 %v1234_v32, %v726_v33 }
  0xc8   : > { %802 = vmatpush.msrb.mxu3 %v727_v34 }
 0x146   : > { %v753_v20 = vpop.f32.mrf.mxu3 }
 0x147   : > { %756 = vst.msk [vmem:[%s586_s22] sm:$0xff] %vm729_vm1, %v753_v20  ;;  %v759_v21 = vadd.f32 %v758_v19, %v753_v20 }
 0x149   : > { %v760_v22 = vsel %vm729_vm1, %v759_v21, -inf }
 0x14a   : > { %761 = vmax.xlane.f32.xlu0 %v760_v22 }
 0x1bd   : > { %v762_v27 = vpop.xlane.xlu0 %761 }
 0x1be   : > { %v763_v28 = vsub.f32 %v759_v21, %v762_v27 }
 0x1c0   : > { %v764_v29 = vmul.f32 1.442695, %v763_v28 }
 0x1c2   : > { %1235 = vpow2.f32 %v764_v29 }
 0x1c8   : > { %v1236_v30 = vpop.eup %1235 }
 0x1c9   : > { %v766_v31 = vsel %vm729_vm1, %v1236_v30, 0.0 }
 0x1ca   : > { %767 = vadd.xlane.f32.xlu0 %v766_v31 }
 0x23d   : > { %v768_v36 = vpop.xlane.xlu0 %767 }
 0x23e   : > { %1237 = vrcp.f32 %v768_v36  ;;  %v780_v40 = vand.u32 2147483648, %v768_v36  ;;  %v778_v42 = vand.u32 2147483647, %v768_v36  ;;  %vm774_vm3 = vweird.f32 %v768_v36 }
 0x240   : > { %v781_v44 = vor.u32 1.1754944e-38, %v780_v40  ;;  %vm779_vm5 = vcmp.eq.f32.partialorder %v778_v42, 8.507059e+37 }
 0x244   : > { %v1238_v37 = vpop.eup %1237 }
 0x245   : > { %v770_v38 = vmul.f32 %v1238_v37, %v768_v36  ;;  %vm775_vm2 = vweird.f32 %v1238_v37 }
 0x246   : > { %vm776_vm4 = vmor %vm774_vm3, %vm775_vm2 }
 0x247   : > { %v771_v39 = vsub.f32 1.0, %v770_v38 }
 0x249   : > { %v772_v41 = vmul.f32 %v1238_v37, %v771_v39 }
 0x24b   : > { %v773_v43 = vadd.f32 %v1238_v37, %v772_v41 }
 0x24d   : > { %v777_v45 = vsel %vm776_vm4, %v1238_v37, %v773_v43 }
 0x24e   : > { %v782_v46 = vsel %vm779_vm5, %v781_v44, %v777_v45 }
 0x24f   : > { %v783_v47 = vmul.f32 %v1236_v30, %v782_v46 }
 0x251   : > { %1119 = vmatmul.msk.f32.vlgmr.msrb.gmra.mxu3 %vm729_vm1, %v783_v47 }
 0x2d4   : > { %v804_v48 = vpop.f32.mrf.mxu3 }
 0x2d5   : > { %1120 = vmatmul.msk.f32.vlgmr.msrb.gmra.mxu0 %vm729_vm1, %v804_v48 }
 0x34e   : > { %834 = sbr.rel (%p1121_p6) target bundleno = 853 (0x355), region = 72 }
 0x352   : > { %v828_v49 = vpop.f32.mrf.mxu0 }
 0x353   : > { %v1239_v50 = vld [vmem:[%s1807_s12] ss:$0 sm:$0xff] }
 0x354   : > { %839 = vst.msk [vmem:[%s579_s28] sm:$0xff] %vm642_vm0, %v1239_v50 }
 0x355 PF: > { %s1124_s4 = sshll.u32 %s1378_s15, 3  ;;  %s1809_s24 = sld [smem:[#allocation28_spill]] }
 0x356   : > { %s861_s7 = sshll.u32 %s579_s28, 4  ;;  %s1810_s21 = sand.u32 1, %s1366_s29   ;;  %s862_s7 = int_to_ptr.vmem [resolvable:$true] %s861_s7 }
 0x357   : > { %s844_s20 = scalar_lea.sflag [#allocation3], %s1810_s21 }
 0x35b   : > { %v840_v51 = vld [vmem:[%s579_s28] sm:$0xff]  ;;  %s859_s11 = scalar_lea.hbm %s1809_s24, %s1124_s4  ;;  %s1260_s6 = scalar_lea.hbm %s1809_s24, 16 }
 0x35c   : > { %v841_v52 = vadd.f32 %v840_v51, %v828_v49  ;;  %s863_s9 = sshll.u32 %s859_s11, 4  ;;  %s864_s9 = int_to_ptr.hbm [resolvable:$true] %s863_s9 }
 0x35d   : > { %s1254_s27 = sshra.s32 %s864_s9, 4  ;;  %s1255_s27 = int_to_ptr.hbm [resolvable:$true] %s1254_s27 }
 0x35e   : > { %842 = vst.msk [vmem:[%s579_s28] sm:$0xff] %vm642_vm0, %v841_v52  ;;  %s1256_s23 = scalar_lea.hbm %s1255_s27, 8  ;;  %p1261_p11 = scmp.lt.s32.totalorder %s1255_s27, %s1809_s24 }
 0x35f   : > { %p1257_p8 = scmp.ne.s32.totalorder %s1255_s27, %s1256_s23  ;;  %p1262_p0 = scmp.lt.s32.totalorder %s1260_s6, %s1256_s23 }
 0x361   : > { %p1258_p9 = pnand %p1257_p8, %p1533_p3  ;;  %p1263_p1 = por %p1262_p0, %p1261_p11 }
 0x363   : > { %p1259_p10 = pneg %p1258_p9 }
 0x365   : > { %p1264_p4 = pnand %p1263_p1, %p1259_p10 }
 0x367   : > { %1267 = shalt.err (!%p1264_p4)
}
 0x368   : > { %1132 = dma.vmem_to_hbm [thread:$0]  (%p1533_p3), %s862_s7, 128, %s864_s9, %s844_s20  }
 0x369   : > { %s1125_s28 = sshll.u32 %s1378_s15, 2  ;;  %s877_s30 = sshll.u32 %s586_s22, 4  ;;  %s878_s30 = int_to_ptr.vmem [resolvable:$true] %s877_s30 }
 0x36a   : > { %s873_s11 = sadd.s32 %s1374_s14, %s1125_s28  ;;  %s1811_s27 = sld [smem:[#allocation29_spill]] }
 0x36b   : > { %s1126_s21 = sshll.u32 %s873_s11, 3  ;;  %s1813_s16 = sand.u32 1, %s1354_s26  }
 0x36c   : > { %s849_s19 = scalar_lea.sflag [#allocation5], %s1813_s16 }
 0x370   : > { %s1812_s0 = smov %s1811_s27  ;;  %s875_s23 = scalar_lea.hbm %s1811_s27, %s1126_s21 }
 0x371   : > { %s879_s6 = sshll.u32 %s875_s23, 4  ;;  %s1288_s14 = scalar_lea.hbm %s1812_s0, 64  ;;  %s880_s6 = int_to_ptr.hbm [resolvable:$true] %s879_s6 }
 0x372   : > { %s1282_s1 = sshra.s32 %s880_s6, 4  ;;  %s1283_s1 = int_to_ptr.hbm [resolvable:$true] %s1282_s1 }
 0x373   : > { %s1284_s2 = scalar_lea.hbm %s1283_s1, 8  ;;  %p1289_p6 = scmp.lt.s32.totalorder %s1283_s1, %s1812_s0 }
 0x374   : > { %p1285_p2 = scmp.ne.s32.totalorder %s1283_s1, %s1284_s2  ;;  %p1290_p8 = scmp.lt.s32.totalorder %s1288_s14, %s1284_s2 }
 0x376   : > { %p1286_p3 = pnand %p1285_p2, %p1562_p12  ;;  %p1291_p9 = por %p1290_p8, %p1289_p6 }
 0x378   : > { %p1287_p5 = pneg %p1286_p3 }
 0x37a   : > { %p1292_p10 = pnand %p1291_p9, %p1287_p5 }
 0x37c   : > { %1295 = shalt.err (!%p1292_p10)
}
 0x37d   : > { %1133 = dma.vmem_to_hbm [thread:$0]  (%p1562_p12), %s878_s30, 128, %s880_s6, %s849_s19  }
 0x37e PF: > { %s1814_s9 = sld [smem:[#allocation9_spill]]  ;;  %p1143_p11 = scmp.ge.s32.totalorder %s1390_s18, 2 }
 0x380   : > { %p1137_p0 = pnand %p1143_p11, %p1550_p7 }
 0x382   : > { %p1138_p1 = pneg %p1137_p0 }
 0x384   : > { %s891_s20 = sand.u32 1, %s1814_s9  }
 0x385   : > { %s892_s28 = scalar_lea.sflag [#allocation3], %s891_s20 }
 0x386   : > { %1341 = dma.done.wait (%p1138_p1), %s892_s28, 128  }
 0x387   : > { %1343 = vsyncadd (%p1138_p1), %s892_s28, 4294967168  ;;  %s901_s2 = sand.u32 1, %s1350_s25   ;;  %p1140_p4 = pnand %p1143_p11, %p1574_p13 }
 0x388   : > { %s902_s13 = scalar_lea.sflag [#allocation5], %s901_s2 }
 0x389   : > { %p1141_p2 = pneg %p1140_p4 }
 0x38b   : > { %1345 = dma.done.wait (%p1141_p2), %s902_s13, 128  }
 0x38c   : > { %1347 = vsyncadd (%p1141_p2), %s902_s13, 4294967168  ;;  %s30_s18 = sadd.s32 1, %s1390_s18   ;;  %s1816_s30 = sld [smem:[#allocation8_spill]] }
 0x38d   : > { %p27_p12 = scmp.ge.s32.totalorder %s30_s18, 10   ;;  %s1817_s27 = sld [smem:[#allocation17_spill]] }
 0x38e   : > { %s1818_s10 = sld [smem:[#allocation10_spill]]  ;;  %s1824_s25 = smov %s1354_s26 }
 0x38f   : > { %s1819_s11 = sld [smem:[#allocation16_spill]]  ;;  %s1826_s28 = smov %s1366_s29 }
 0x390   : > { %s1820_s14 = sld [smem:[#allocation11_spill]] }
 0x391   : > { %s1821_s15 = sld [smem:[#allocation12_spill]]  ;;  %29 = sbr.rel (!%p27_p12) target bundleno = 21 (0x15), region = 154 }
 0x392   : > { %s1822_s16 = sld [smem:[#allocation13_spill]]  ;;  %s1825_s26 = smov %s1816_s30 }
 0x393   : > { %s1823_s17 = sld [smem:[#allocation15_spill]] }
 0x394   : > { %s1827_s29 = smov %s1818_s10 }
 0x395   : > { %s1828_s30 = smov %s1819_s11 }
 0x396   :  { %908 = vsyncpa [#allocation3], 1 }
 0x397   :  { %910 = vsyncpa [#allocation3 + $0x1], 1 }
 0x398   :  { %911 = vsyncpa [#allocation5], 1 }
 0x399   :  { %913 = vsyncpa [#allocation5 + $0x1], 1 }

</bundles_post_ra>
